<compile_context>
chip_gen: v7x
topology: tpu7x:2x2x1
jax: 0.10.0
libtpu: 0.0.40
codegen_flags: <defaults>
</compile_context>

<pallas_src>
import math

import jax
import jax.numpy as jnp
from jax.experimental import pallas as pl
from jax.experimental.pallas import tpu as pltpu
from jax.scipy.special import logsumexp

EPS = 1e-5
# Canonical minimum padded sample count: the S=1 solver call and the
# iter_samples=16 AMIS calls compile to the same Mosaic kernel variant.
MIN_SAMPLE_PAD = 16


def _round_up(x, m):
    return ((x + m - 1) // m) * m


def quat_to_rotmat(q):
    q = q * jax.lax.rsqrt(jnp.sum(q * q, axis=-1, keepdims=True) + EPS)
    w, x, y, z = q[..., 0], q[..., 1], q[..., 2], q[..., 3]
    R = jnp.stack([
        1 - 2 * (y * y + z * z), 2 * (x * y - w * z), 2 * (x * z + w * y),
        2 * (x * y + w * z), 1 - 2 * (x * x + z * z), 2 * (y * z - w * x),
        2 * (x * z - w * y), 2 * (y * z + w * x), 1 - 2 * (x * x + y * y)],
        axis=-1).reshape(q.shape[:-1] + (3, 3))
    return R


# --------------------------------------------------------------------------
# Pallas kernel: batched PnP reprojection cost (the evaluate_pnp hot path)
# --------------------------------------------------------------------------
def _pnp_cost_kernel(pose_ref, pts_ref, cost_ref):
    # pose_ref: (O, TS, 12)  rows [r00..r22, tx,ty,tz]  (quat->R done in wrapper)
    # pts_ref:  (O, 8, N)    rows [px,py,pz, x2u',x2v', wu',wv', pad]  (camera folded in)
    # cost_ref: (O, TS, 1)
    num_obj = pose_ref.shape[0]
    for o in range(num_obj):                       # static unroll; num_obj is tiny
        pose = pose_ref[o]                         # (TS, 12)
        pts = pts_ref[o]                           # (8, N)

        r00 = pose[:, 0:1]
        r01 = pose[:, 1:2]
        r02 = pose[:, 2:3]
        r10 = pose[:, 3:4]
        r11 = pose[:, 4:5]
        r12 = pose[:, 5:6]
        r20 = pose[:, 6:7]
        r21 = pose[:, 7:8]
        r22 = pose[:, 8:9]
        tx = pose[:, 9:10]
        ty = pose[:, 10:11]
        tz = pose[:, 11:12]

        px = pts[0:1, :]                           # (1, N)
        py = pts[1:2, :]
        pz = pts[2:3, :]
        x2u = pts[3:4, :]
        x2v = pts[4:5, :]
        wu = pts[5:6, :]
        wv = pts[6:7, :]

        # camera-frame coordinates, (TS, N): (TS,1)*(1,N) broadcasts (VPU only)
        Xc = r00 * px + r01 * py + r02 * pz + tx
        Yc = r10 * px + r11 * py + r12 * pz + ty
        Zc = jnp.maximum(r20 * px + r21 * py + r22 * pz + tz, 1e-4)

        inv_z = pl.reciprocal(Zc, approx=True)     # EUP slot (free-ish)

        # (Xc - x2u*Zc)*inv_z == Xc/Zc - x2u  (approx-rcp error stays multiplicative)
        ru = (Xc - x2u * Zc) * inv_z * wu
        rv = (Yc - x2v * Zc) * inv_z * wv
        # 0.5 * || w2d * (proj(x3d, pose) - x2d) ||^2, reduced over points & uv
        cost_ref[o] = 0.5 * jnp.sum(ru * ru + rv * rv, axis=-1, keepdims=True)


def make_point_buffers(x3d, x2d, w2d, cam):
    """Build the single channel-major, camera-folded kernel input.

    x3d: (O, N, 3); x2d/w2d: (O, N, 2); cam: (O, 4) = [fx, fy, cx, cy].
    Returns pts_cm: (O, 8, N) with rows [px,py,pz, x2u',x2v', wu',wv', 0],
    where x2' = (x2 - c)/f and w' = w*f (mathematically equivalent cost).
    """
    cam = cam.astype(jnp.float32)
    f = cam[:, None, 0:2]                            # (O, 1, 2)
    c = cam[:, None, 2:4]
    x2n = (x2d.astype(jnp.float32) - c) / f
    w2s = w2d.astype(jnp.float32) * f
    num_obj, num_pts, _ = x3d.shape
    pts_cm = jnp.concatenate([
        jnp.transpose(x3d.astype(jnp.float32), (0, 2, 1)),   # (O, 3, N)
        jnp.transpose(x2n, (0, 2, 1)),                       # (O, 2, N)
        jnp.transpose(w2s, (0, 2, 1)),                       # (O, 2, N)
        jnp.zeros((num_obj, 1, num_pts), jnp.float32),       # pad -> 8 sublanes
    ], axis=1)
    return pts_cm


def _poses_to_rt(poses):
    """(S, O, 7) [t, q] -> (O, S, 12) [r00..r22, tx, ty, tz] (quat->R hoisted here)."""
    R = quat_to_rotmat(poses[..., 3:7])                       # (S, O, 3, 3)
    rt = jnp.concatenate(
        [R.reshape(poses.shape[:-1] + (9,)), poses[..., 0:3]], axis=-1)
    return jnp.transpose(rt, (1, 0, 2))                       # (O, S, 12)


def pnp_cost(poses, pts_cm):
    """poses: (S, O, 7); pts_cm: (O, 8, N) -> cost (S, O) f32."""
    poses = poses.astype(jnp.float32)
    S, O, _ = poses.shape
    N = pts_cm.shape[-1]

    # Samples go on sublanes. Canonical padding (min 16) keeps one Mosaic
    # variant across call sites; tile_s up to 64 keeps live vregs < file size.
    s_pad = _round_up(max(S, MIN_SAMPLE_PAD), 8)
    tile_s = min(s_pad, 64)
    s_pad = _round_up(s_pad, tile_s)

    pose_rt = _poses_to_rt(poses)                    # (O, S, 12)
    if s_pad != S:
        # Padded rows are all-zero (R=0, t=0): Zc clamps to 1e-4, cost is
        # finite, and the rows are sliced off below.
        pose_rt = jnp.pad(pose_rt, ((0, 0), (0, s_pad - S), (0, 0)))

    cost_est = pl.CostEstimate(
        flops=int(34 * s_pad * O * N),
        transcendentals=int(s_pad * O * N),
        bytes_accessed=int(4 * (s_pad * O * 12 + O * 8 * N + s_pad * O)),
    )

    out = pl.pallas_call(
        _pnp_cost_kernel,
        out_shape=jax.ShapeDtypeStruct((O, s_pad, 1), jnp.float32),
        grid_spec=pltpu.PrefetchScalarGridSpec(
            num_scalar_prefetch=0,
            grid=(s_pad // tile_s,),
            in_specs=[
                pl.BlockSpec((O, tile_s, 12), lambda s: (0, s, 0)),
                pl.BlockSpec((O, 8, N), lambda s: (0, 0, 0)),
            ],
            out_specs=pl.BlockSpec((O, tile_s, 1), lambda s: (0, s, 0)),
        ),
        compiler_params=pltpu.CompilerParams(
            dimension_semantics=("parallel",)),
        cost_estimate=cost_est,
    )(pose_rt, pts_cm.astype(jnp.float32))
    return jnp.transpose(out[:, :S, 0], (1, 0))      # (S, O)


# --------------------------------------------------------------------------
# Simplified proposal distributions (stand-ins for the abstract methods)
# --------------------------------------------------------------------------
class DiagGaussian:
    def __init__(self, mean, std):
        self.mean = mean
        self.std = std

    def sample(self, key, n):
        shape = (n,) + self.mean.shape
        return self.mean + self.std * jax.random.normal(key, shape, dtype=self.mean.dtype)

    def log_prob(self, x):
        z = (x - self.mean) / self.std
        d = self.mean.shape[-1]
        return (jnp.sum(-0.5 * z * z - jnp.log(self.std), axis=-1)
                - 0.5 * d * math.log(2.0 * math.pi))


class QuatGaussian(DiagGaussian):
    # TODO(synk): real EProPnP6DoF rotation proposal is an angular central Gaussian
    # over unit quaternions; here a normalized diagonal Gaussian is used.
    def sample(self, key, n):
        q = super().sample(key, n)
        return q * jax.lax.rsqrt(jnp.sum(q * q, axis=-1, keepdims=True) + EPS)


# --------------------------------------------------------------------------
# EProPnPBase port (concrete 6DoF flavour)
# --------------------------------------------------------------------------
class EProPnP6DoFPallas:
    def __init__(self, mc_samples=64, num_iter=4, normalize=False, eps=1e-5, solver=None):
        assert num_iter > 0
        assert mc_samples % num_iter == 0
        self.mc_samples = mc_samples
        self.num_iter = num_iter
        self.iter_samples = mc_samples // num_iter
        self.eps = eps
        self.normalize = normalize  # TODO(synk): pnp_normalize/denormalize not ported
        self.solver = solver if solver is not None else self._default_solver
        # One jit for the whole AMIS forward (num_iter / iter_samples are
        # Python constants baked in at trace time) -> one dispatch end-to-end.
        self._mc_forward_jit = jax.jit(self._monte_carlo_forward_impl)

    # ---- solver --------------------------------------------------------
    def _default_solver(self, x3d, x2d, w2d, cam, pose_init=None, cost_init=None,
                        with_pose_cov=True, force_init_solve=True, **kwargs):
        # TODO(synk): the real Levenberg-Marquardt PnP solver is not ported; this
        # returns pose_init (or a canonical pose) plus a fixed diagonal covariance,
        # with the cost evaluated by the Pallas kernel.
        num_obj = x3d.shape[0]
        if pose_init is not None:
            pose_opt = pose_init.astype(jnp.float32)
        else:
            t0 = jnp.tile(jnp.array([[0.0, 0.0, 3.0]], jnp.float32), (num_obj, 1))
            q0 = jnp.tile(jnp.array([[1.0, 0.0, 0.0, 0.0]], jnp.float32), (num_obj, 1))
            pose_opt = jnp.concatenate([t0, q0], axis=-1)
        pose_cov = jnp.tile((0.01 * jnp.eye(6, dtype=jnp.float32))[None], (num_obj, 1, 1))
        if cost_init is not None and pose_init is not None:
            cost = cost_init
        else:
            pts_cm = make_point_buffers(x3d, x2d, w2d, cam)
            cost = pnp_cost(pose_opt[None], pts_cm)[0]
        if with_pose_cov:
            return pose_opt, pose_cov, cost, pose_opt
        return pose_opt, cost, pose_opt

    def forward(self, *args, **kwargs):
        # Matches EProPnPBase.forward: delegate to the solver.
        return self.solver(*args, **kwargs)

    __call__ = forward

    # ---- abstract-method stand-ins --------------------------------------
    def allocate_buffer(self, num_obj, dtype=jnp.float32):
        return dict(
            trans_mean=jnp.zeros((self.num_iter, num_obj, 3), dtype),
            trans_std=jnp.ones((self.num_iter, num_obj, 3), dtype),
            rot_mean=jnp.zeros((self.num_iter, num_obj, 4), dtype).at[..., 0].set(1.0),
            rot_std=jnp.ones((self.num_iter, num_obj, 4), dtype),
        )

    def initial_fit(self, pose_opt, pose_cov, camera, params):
        t_var = jnp.diagonal(pose_cov[:, :3, :3], axis1=-2, axis2=-1)
        t_std = jnp.sqrt(jnp.clip(t_var, self.eps, None))
        params = dict(params)
        params['trans_mean'] = params['trans_mean'].at[0].set(pose_opt[:, :3])
        params['trans_std'] = params['trans_std'].at[0].set(t_std)
        params['rot_mean'] = params['rot_mean'].at[0].set(pose_opt[:, 3:])
        params['rot_std'] = params['rot_std'].at[0].set(jnp.full_like(pose_opt[:, 3:], 0.05))
        return params

    def gen_new_distr(self, i, params):
        return (DiagGaussian(params['trans_mean'][i], params['trans_std'][i]),
                QuatGaussian(params['rot_mean'][i], params['rot_std'][i]))

    def gen_old_distr(self, i, params):
        tm = params['trans_mean'][:i][:, None]
        ts = params['trans_std'][:i][:, None]
        rm = params['rot_mean'][:i][:, None]
        rs = params['rot_std'][:i][:, None]
        return DiagGaussian(tm, ts), QuatGaussian(rm, rs)

    def estimate_params(self, i, pose_samples_flat, logweights_flat, params):
        # TODO(synk): quaternion averaging without antipodal sign alignment (q vs -q).
        w = jax.nn.softmax(logweights_flat, axis=0)[..., None]      # (S, O, 1)
        t = pose_samples_flat[..., :3]
        q = pose_samples_flat[..., 3:]
        t_mean = jnp.sum(w * t, axis=0)
        t_std = jnp.sqrt(jnp.sum(w * (t - t_mean) ** 2, axis=0) + self.eps)
        q_mean = jnp.sum(w * q, axis=0)
        q_mean = q_mean * jax.lax.rsqrt(jnp.sum(q_mean * q_mean, -1, keepdims=True) + EPS)
        q_std = jnp.sqrt(jnp.sum(w * (q - q_mean) ** 2, axis=0) + self.eps)
        params = dict(params)
        params['trans_mean'] = params['trans_mean'].at[i + 1].set(t_mean)
        params['trans_std'] = params['trans_std'].at[i + 1].set(t_std)
        params['rot_mean'] = params['rot_mean'].at[i + 1].set(q_mean)
        params['rot_std'] = params['rot_std'].at[i + 1].set(q_std)
        return params

    # ---- Monte Carlo forward (AMIS) --------------------------------------
    def monte_carlo_forward(self, key, x3d, x2d, w2d, cam, pose_init=None,
                            force_init_solve=True):
        # force_init_solve is irrelevant for the simplified default solver.
        assert x3d.ndim == x2d.ndim == w2d.ndim == 3
        assert x3d.shape[0] > 0
        return self._mc_forward_jit(key, x3d, x2d, w2d, cam, pose_init)

    def _monte_carlo_forward_impl(self, key, x3d, x2d, w2d, cam, pose_init):
        num_obj = x3d.shape[0]
        pts_cm = make_point_buffers(x3d, x2d, w2d, cam)
        evaluate_fun = lambda poses: pnp_cost(poses, pts_cm)

        cost_init = evaluate_fun(pose_init[None])[0] if pose_init is not None else None
        pose_opt, pose_cov, cost, pose_opt_plus = self.solver(
            x3d, x2d, w2d, cam, pose_init=pose_init, cost_init=cost_init,
            with_pose_cov=True, force_init_solve=True)

        T = self.iter_samples
        pose_samples = jnp.zeros((self.num_iter, T, num_obj, 7), jnp.float32)
        logprobs = jnp.zeros((self.num_iter, self.num_iter, T, num_obj), jnp.float32)
        cost_pred = jnp.zeros((self.num_iter, T, num_obj), jnp.float32)

        params = self.allocate_buffer(num_obj)
        params = self.initial_fit(jax.lax.stop_gradient(pose_opt),
                                  jax.lax.stop_gradient(pose_cov), cam, params)

        pose_sample_logweights = None
        for i in range(self.num_iter):           # static unroll (num_iter is Python int)
            key, kt, kr = jax.random.split(key, 3)
            new_trans, new_rot = self.gen_new_distr(i, params)
            t_s = new_trans.sample(kt, T)                       # (T, O, 3)
            r_s = new_rot.sample(kr, T)                         # (T, O, 4)
            pose_samples = pose_samples.at[i].set(jnp.concatenate([t_s, r_s], axis=-1))
            cost_pred = cost_pred.at[i].set(evaluate_fun(pose_samples[i]))
            lp_new = (new_trans.log_prob(pose_samples[:i + 1, ..., :3])
                      + new_rot.log_prob(pose_samples[:i + 1, ..., 3:]))
            logprobs = logprobs.at[i, :i + 1].set(lp_new)
            if i > 0:
                old_trans, old_rot = self.gen_old_distr(i, params)
                lp_old = (old_trans.log_prob(pose_samples[i, ..., :3])
                          + old_rot.log_prob(pose_samples[i, ..., 3:]))
                logprobs = logprobs.at[:i, i].set(lp_old)
            # AMIS log-weights: tiny, computed inline (fused by XLA, no extra kernel)
            mix_logprobs = logsumexp(logprobs[:i + 1, :i + 1], axis=0) - math.log(i + 1)
            pose_sample_logweights = -cost_pred[:i + 1] - mix_logprobs
            if i == self.num_iter - 1:
                break
            params = self.estimate_params(
                i,
                jax.lax.stop_gradient(pose_samples[:i + 1]).reshape((i + 1) * T, num_obj, 7),
                jax.lax.stop_gradient(pose_sample_logweights).reshape((i + 1) * T, num_obj),
                params)

        pose_samples = pose_samples.reshape(self.mc_samples, num_obj, 7)
        pose_sample_logweights = pose_sample_logweights.reshape(self.mc_samples, num_obj)
        return pose_opt, cost, pose_opt_plus, pose_samples, pose_sample_logweights, cost_init


# --------------------------------------------------------------------------
# Pure-JAX reference for the cost kernel (for a correctness sanity check)
# --------------------------------------------------------------------------
def pnp_cost_ref(poses, x3d, x2d, w2d, cam):
    # poses: (S, O, 7); x3d: (O, N, 3); x2d/w2d: (O, N, 2); cam: (O, 4)
    R = quat_to_rotmat(poses[..., 3:])                          # (S, O, 3, 3)
    xc = jnp.einsum('soij,onj->soni', R, x3d) + poses[..., None, :3]
    z = jnp.maximum(xc[..., 2], 1e-4)
    u = cam[None, :, None, 0] * xc[..., 0] / z + cam[None, :, None, 2]
    v = cam[None, :, None, 1] * xc[..., 1] / z + cam[None, :, None, 3]
    res = (jnp.stack([u, v], axis=-1) - x2d[None]) * w2d[None]
    return 0.5 * jnp.sum(res * res, axis=(-2, -1))


if __name__ == "__main__":
    key = jax.random.PRNGKey(0)
    num_obj, num_pts = 2, 128
    k1, k2, k3, k4 = jax.random.split(key, 4)

    x3d = jax.random.uniform(k1, (num_obj, num_pts, 3), jnp.float32, -1.0, 1.0)
    q_gt = jax.random.normal(k2, (num_obj, 4), jnp.float32)
    q_gt = q_gt / jnp.linalg.norm(q_gt, axis=-1, keepdims=True)
    t_gt = jnp.array([[0.1, -0.05, 4.0], [-0.2, 0.1, 5.0]], jnp.float32)
    cam = jnp.tile(jnp.array([[500.0, 500.0, 128.0, 128.0]], jnp.float32), (num_obj, 1))

    R_gt = quat_to_rotmat(q_gt)
    xc = jnp.einsum('oij,onj->oni', R_gt, x3d) + t_gt[:, None, :]
    u = cam[:, None, 0] * xc[..., 0] / xc[..., 2] + cam[:, None, 2]
    v = cam[:, None, 1] * xc[..., 1] / xc[..., 2] + cam[:, None, 3]
    x2d = jnp.stack([u, v], axis=-1) + 0.5 * jax.random.normal(k3, (num_obj, num_pts, 2), jnp.float32)
    w2d = jax.nn.softmax(jax.random.normal(k4, (num_obj, num_pts, 2), jnp.float32), axis=1)
    pose_init = jnp.concatenate([t_gt + 0.05, q_gt], axis=-1)

    model = EProPnP6DoFPallas(mc_samples=64, num_iter=4)

    # sanity check the Pallas cost kernel against the pure-JAX reference
    # (two test poses: ground truth -> small cost, perturbed init -> large cost)
    poses_test = jnp.stack([jnp.concatenate([t_gt, q_gt], axis=-1), pose_init], axis=0)
    pts_cm = make_point_buffers(x3d, x2d, w2d, cam)
    cost_kernel = pnp_cost(poses_test, pts_cm)
    cost_reference = pnp_cost_ref(poses_test, x3d, x2d, w2d, cam)
    jax.block_until_ready((cost_kernel, cost_reference))
    # approx-reciprocal error is purely multiplicative on the residual -> loose rtol
    assert jnp.allclose(cost_kernel, cost_reference, rtol=1e-2, atol=1e-5), \
        (cost_kernel, cost_reference)

    # forward() == solver(...)
    fwd_out = model.forward(x3d, x2d, w2d, cam, pose_init=pose_init)
    jax.block_until_ready(fwd_out)

    # Monte Carlo forward (the compute-heavy path, one jitted dispatch)
    outputs = model.monte_carlo_forward(jax.random.PRNGKey(0), x3d, x2d, w2d, cam,
                                        pose_init=pose_init)
    pose_opt, cost, pose_opt_plus, pose_samples, pose_sample_logweights, cost_init = outputs
    jax.block_until_ready((pose_opt, cost, pose_opt_plus, pose_samples,
                           pose_sample_logweights, cost_init))

    assert pose_samples.shape == (model.mc_samples, num_obj, 7)
    assert pose_sample_logweights.shape == (model.mc_samples, num_obj)
    assert cost_init.shape == (num_obj,)
    assert bool(jnp.all(jnp.isfinite(pose_sample_logweights)))
    print("KERNEL_OK")
</pallas_src>

<mosaic_0001>
module attributes {stable_mosaic.version = 11 : i64} {
  func.func @_pnp_cost_kernel(%arg0: i32, %arg1: memref<2x16x12xf32, #tpu.memory_space<vmem>>, %arg2: memref<2x8x128xf32, #tpu.memory_space<vmem>>, %arg3: memref<2x16x1xf32, #tpu.memory_space<vmem>>) attributes {dimension_semantics = [#tpu.dimension_semantics<parallel>], iteration_bounds = array<i64: 1>, scalar_prefetch = 0 : i64, scratch_operands = 0 : i64, tpu.core_type = #tpu.core_type<tc>, window_params = [{transform_indices = @transform_0, window_bounds = array<i64: 2, 16, 12>}, {pipeline_mode = #tpu.pipeline_mode<synchronous>, transform_indices = @transform_1, window_bounds = array<i64: 2, 8, 128>}, {transform_indices = @transform_2, window_bounds = array<i64: 2, 16, 1>}]} {
    %c0 = arith.constant 0 : index
    %c0_0 = arith.constant 0 : index
    %c0_1 = arith.constant 0 : index
    %0 = vector.load %arg1[%c0, %c0_0, %c0_1] : memref<2x16x12xf32, #tpu.memory_space<vmem>>, vector<1x16x12xf32>
    %1 = vector.shape_cast %0 : vector<1x16x12xf32> to vector<16x12xf32>
    %c0_2 = arith.constant 0 : index
    %c0_3 = arith.constant 0 : index
    %c0_4 = arith.constant 0 : index
    %2 = vector.load %arg2[%c0_2, %c0_3, %c0_4] : memref<2x8x128xf32, #tpu.memory_space<vmem>>, vector<1x8x128xf32>
    %3 = vector.shape_cast %2 : vector<1x8x128xf32> to vector<8x128xf32>
    %4 = vector.extract_strided_slice %1 {offsets = [0, 0], sizes = [16, 1], strides = [1, 1]} : vector<16x12xf32> to vector<16x1xf32>
    %5 = vector.extract_strided_slice %1 {offsets = [0, 1], sizes = [16, 1], strides = [1, 1]} : vector<16x12xf32> to vector<16x1xf32>
    %6 = vector.extract_strided_slice %1 {offsets = [0, 2], sizes = [16, 1], strides = [1, 1]} : vector<16x12xf32> to vector<16x1xf32>
    %7 = vector.extract_strided_slice %1 {offsets = [0, 3], sizes = [16, 1], strides = [1, 1]} : vector<16x12xf32> to vector<16x1xf32>
    %8 = vector.extract_strided_slice %1 {offsets = [0, 4], sizes = [16, 1], strides = [1, 1]} : vector<16x12xf32> to vector<16x1xf32>
    %9 = vector.extract_strided_slice %1 {offsets = [0, 5], sizes = [16, 1], strides = [1, 1]} : vector<16x12xf32> to vector<16x1xf32>
    %10 = vector.extract_strided_slice %1 {offsets = [0, 6], sizes = [16, 1], strides = [1, 1]} : vector<16x12xf32> to vector<16x1xf32>
    %11 = vector.extract_strided_slice %1 {offsets = [0, 7], sizes = [16, 1], strides = [1, 1]} : vector<16x12xf32> to vector<16x1xf32>
    %12 = vector.extract_strided_slice %1 {offsets = [0, 8], sizes = [16, 1], strides = [1, 1]} : vector<16x12xf32> to vector<16x1xf32>
    %13 = vector.extract_strided_slice %1 {offsets = [0, 9], sizes = [16, 1], strides = [1, 1]} : vector<16x12xf32> to vector<16x1xf32>
    %14 = vector.extract_strided_slice %1 {offsets = [0, 10], sizes = [16, 1], strides = [1, 1]} : vector<16x12xf32> to vector<16x1xf32>
    %15 = vector.extract_strided_slice %1 {offsets = [0, 11], sizes = [16, 1], strides = [1, 1]} : vector<16x12xf32> to vector<16x1xf32>
    %16 = vector.extract_strided_slice %3 {offsets = [0, 0], sizes = [1, 128], strides = [1, 1]} : vector<8x128xf32> to vector<1x128xf32>
    %17 = vector.extract_strided_slice %3 {offsets = [1, 0], sizes = [1, 128], strides = [1, 1]} : vector<8x128xf32> to vector<1x128xf32>
    %18 = vector.extract_strided_slice %3 {offsets = [2, 0], sizes = [1, 128], strides = [1, 1]} : vector<8x128xf32> to vector<1x128xf32>
    %19 = vector.extract_strided_slice %3 {offsets = [3, 0], sizes = [1, 128], strides = [1, 1]} : vector<8x128xf32> to vector<1x128xf32>
    %20 = vector.extract_strided_slice %3 {offsets = [4, 0], sizes = [1, 128], strides = [1, 1]} : vector<8x128xf32> to vector<1x128xf32>
    %21 = vector.extract_strided_slice %3 {offsets = [5, 0], sizes = [1, 128], strides = [1, 1]} : vector<8x128xf32> to vector<1x128xf32>
    %22 = vector.extract_strided_slice %3 {offsets = [6, 0], sizes = [1, 128], strides = [1, 1]} : vector<8x128xf32> to vector<1x128xf32>
    %23 = vector.broadcast %4 : vector<16x1xf32> to vector<16x128xf32>
    %24 = vector.broadcast %16 : vector<1x128xf32> to vector<16x128xf32>
    %25 = arith.mulf %23, %24 : vector<16x128xf32>
    %26 = vector.broadcast %5 : vector<16x1xf32> to vector<16x128xf32>
    %27 = vector.broadcast %17 : vector<1x128xf32> to vector<16x128xf32>
    %28 = arith.mulf %26, %27 : vector<16x128xf32>
    %29 = arith.addf %25, %28 : vector<16x128xf32>
    %30 = vector.broadcast %6 : vector<16x1xf32> to vector<16x128xf32>
    %31 = vector.broadcast %18 : vector<1x128xf32> to vector<16x128xf32>
    %32 = arith.mulf %30, %31 : vector<16x128xf32>
    %33 = arith.addf %29, %32 : vector<16x128xf32>
    %34 = vector.broadcast %13 : vector<16x1xf32> to vector<16x128xf32>
    %35 = arith.addf %33, %34 : vector<16x128xf32>
    %36 = vector.broadcast %7 : vector<16x1xf32> to vector<16x128xf32>
    %37 = vector.broadcast %16 : vector<1x128xf32> to vector<16x128xf32>
    %38 = arith.mulf %36, %37 : vector<16x128xf32>
    %39 = vector.broadcast %8 : vector<16x1xf32> to vector<16x128xf32>
    %40 = vector.broadcast %17 : vector<1x128xf32> to vector<16x128xf32>
    %41 = arith.mulf %39, %40 : vector<16x128xf32>
    %42 = arith.addf %38, %41 : vector<16x128xf32>
    %43 = vector.broadcast %9 : vector<16x1xf32> to vector<16x128xf32>
    %44 = vector.broadcast %18 : vector<1x128xf32> to vector<16x128xf32>
    %45 = arith.mulf %43, %44 : vector<16x128xf32>
    %46 = arith.addf %42, %45 : vector<16x128xf32>
    %47 = vector.broadcast %14 : vector<16x1xf32> to vector<16x128xf32>
    %48 = arith.addf %46, %47 : vector<16x128xf32>
    %49 = vector.broadcast %10 : vector<16x1xf32> to vector<16x128xf32>
    %50 = vector.broadcast %16 : vector<1x128xf32> to vector<16x128xf32>
    %51 = arith.mulf %49, %50 : vector<16x128xf32>
    %52 = vector.broadcast %11 : vector<16x1xf32> to vector<16x128xf32>
    %53 = vector.broadcast %17 : vector<1x128xf32> to vector<16x128xf32>
    %54 = arith.mulf %52, %53 : vector<16x128xf32>
    %55 = arith.addf %51, %54 : vector<16x128xf32>
    %56 = vector.broadcast %12 : vector<16x1xf32> to vector<16x128xf32>
    %57 = vector.broadcast %18 : vector<1x128xf32> to vector<16x128xf32>
    %58 = arith.mulf %56, %57 : vector<16x128xf32>
    %59 = arith.addf %55, %58 : vector<16x128xf32>
    %60 = vector.broadcast %15 : vector<16x1xf32> to vector<16x128xf32>
    %61 = arith.addf %59, %60 : vector<16x128xf32>
    %cst = arith.constant 9.99999974E-5 : f32
    %62 = vector.broadcast %cst : f32 to vector<16x128xf32>
    %63 = arith.maximumf %61, %62 : vector<16x128xf32>
    %64 = tpu.reciprocal %63 {approx = true} : vector<16x128xf32> -> vector<16x128xf32>
    %65 = vector.broadcast %19 : vector<1x128xf32> to vector<16x128xf32>
    %66 = arith.mulf %65, %63 : vector<16x128xf32>
    %67 = arith.subf %35, %66 : vector<16x128xf32>
    %68 = arith.mulf %67, %64 : vector<16x128xf32>
    %69 = vector.broadcast %21 : vector<1x128xf32> to vector<16x128xf32>
    %70 = arith.mulf %68, %69 : vector<16x128xf32>
    %71 = vector.broadcast %20 : vector<1x128xf32> to vector<16x128xf32>
    %72 = arith.mulf %71, %63 : vector<16x128xf32>
    %73 = arith.subf %48, %72 : vector<16x128xf32>
    %74 = arith.mulf %73, %64 : vector<16x128xf32>
    %75 = vector.broadcast %22 : vector<1x128xf32> to vector<16x128xf32>
    %76 = arith.mulf %74, %75 : vector<16x128xf32>
    %77 = arith.mulf %70, %70 : vector<16x128xf32>
    %78 = arith.mulf %76, %76 : vector<16x128xf32>
    %79 = arith.addf %77, %78 : vector<16x128xf32>
    %cst_5 = arith.constant dense<0.000000e+00> : vector<16xf32>
    %80 = vector.multi_reduction <add>, %79, %cst_5 [1] : vector<16x128xf32> to vector<16xf32>
    %81 = vector.shape_cast %80 : vector<16xf32> to vector<16x1xf32>
    %cst_6 = arith.constant 5.000000e-01 : f32
    %82 = vector.broadcast %cst_6 : f32 to vector<16x1xf32>
    %83 = arith.mulf %82, %81 : vector<16x1xf32>
    %c0_7 = arith.constant 0 : index
    %c0_8 = arith.constant 0 : index
    %c0_9 = arith.constant 0 : index
    %84 = vector.load %arg3[%c0_7, %c0_8, %c0_9] : memref<2x16x1xf32, #tpu.memory_space<vmem>>, vector<1x16x1xf32>
    %85 = vector.shape_cast %84 : vector<1x16x1xf32> to vector<16x1xf32>
    %86 = vector.shape_cast %83 : vector<16x1xf32> to vector<1x16x1xf32>
    tpu.vector_store %arg3[%c0_7, %c0_8, %c0_9], %86 {strides = array<i32>} : memref<2x16x1xf32, #tpu.memory_space<vmem>>, vector<1x16x1xf32>,
    %c1 = arith.constant 1 : index
    %c0_10 = arith.constant 0 : index
    %c0_11 = arith.constant 0 : index
    %87 = vector.load %arg1[%c1, %c0_10, %c0_11] : memref<2x16x12xf32, #tpu.memory_space<vmem>>, vector<1x16x12xf32>
    %88 = vector.shape_cast %87 : vector<1x16x12xf32> to vector<16x12xf32>
    %c1_12 = arith.constant 1 : index
    %c0_13 = arith.constant 0 : index
    %c0_14 = arith.constant 0 : index
    %89 = vector.load %arg2[%c1_12, %c0_13, %c0_14] : memref<2x8x128xf32, #tpu.memory_space<vmem>>, vector<1x8x128xf32>
    %90 = vector.shape_cast %89 : vector<1x8x128xf32> to vector<8x128xf32>
    %91 = vector.extract_strided_slice %88 {offsets = [0, 0], sizes = [16, 1], strides = [1, 1]} : vector<16x12xf32> to vector<16x1xf32>
    %92 = vector.extract_strided_slice %88 {offsets = [0, 1], sizes = [16, 1], strides = [1, 1]} : vector<16x12xf32> to vector<16x1xf32>
    %93 = vector.extract_strided_slice %88 {offsets = [0, 2], sizes = [16, 1], strides = [1, 1]} : vector<16x12xf32> to vector<16x1xf32>
    %94 = vector.extract_strided_slice %88 {offsets = [0, 3], sizes = [16, 1], strides = [1, 1]} : vector<16x12xf32> to vector<16x1xf32>
    %95 = vector.extract_strided_slice %88 {offsets = [0, 4], sizes = [16, 1], strides = [1, 1]} : vector<16x12xf32> to vector<16x1xf32>
    %96 = vector.extract_strided_slice %88 {offsets = [0, 5], sizes = [16, 1], strides = [1, 1]} : vector<16x12xf32> to vector<16x1xf32>
    %97 = vector.extract_strided_slice %88 {offsets = [0, 6], sizes = [16, 1], strides = [1, 1]} : vector<16x12xf32> to vector<16x1xf32>
    %98 = vector.extract_strided_slice %88 {offsets = [0, 7], sizes = [16, 1], strides = [1, 1]} : vector<16x12xf32> to vector<16x1xf32>
    %99 = vector.extract_strided_slice %88 {offsets = [0, 8], sizes = [16, 1], strides = [1, 1]} : vector<16x12xf32> to vector<16x1xf32>
    %100 = vector.extract_strided_slice %88 {offsets = [0, 9], sizes = [16, 1], strides = [1, 1]} : vector<16x12xf32> to vector<16x1xf32>
    %101 = vector.extract_strided_slice %88 {offsets = [0, 10], sizes = [16, 1], strides = [1, 1]} : vector<16x12xf32> to vector<16x1xf32>
    %102 = vector.extract_strided_slice %88 {offsets = [0, 11], sizes = [16, 1], strides = [1, 1]} : vector<16x12xf32> to vector<16x1xf32>
    %103 = vector.extract_strided_slice %90 {offsets = [0, 0], sizes = [1, 128], strides = [1, 1]} : vector<8x128xf32> to vector<1x128xf32>
    %104 = vector.extract_strided_slice %90 {offsets = [1, 0], sizes = [1, 128], strides = [1, 1]} : vector<8x128xf32> to vector<1x128xf32>
    %105 = vector.extract_strided_slice %90 {offsets = [2, 0], sizes = [1, 128], strides = [1, 1]} : vector<8x128xf32> to vector<1x128xf32>
    %106 = vector.extract_strided_slice %90 {offsets = [3, 0], sizes = [1, 128], strides = [1, 1]} : vector<8x128xf32> to vector<1x128xf32>
    %107 = vector.extract_strided_slice %90 {offsets = [4, 0], sizes = [1, 128], strides = [1, 1]} : vector<8x128xf32> to vector<1x128xf32>
    %108 = vector.extract_strided_slice %90 {offsets = [5, 0], sizes = [1, 128], strides = [1, 1]} : vector<8x128xf32> to vector<1x128xf32>
    %109 = vector.extract_strided_slice %90 {offsets = [6, 0], sizes = [1, 128], strides = [1, 1]} : vector<8x128xf32> to vector<1x128xf32>
    %110 = vector.broadcast %91 : vector<16x1xf32> to vector<16x128xf32>
    %111 = vector.broadcast %103 : vector<1x128xf32> to vector<16x128xf32>
    %112 = arith.mulf %110, %111 : vector<16x128xf32>
    %113 = vector.broadcast %92 : vector<16x1xf32> to vector<16x128xf32>
    %114 = vector.broadcast %104 : vector<1x128xf32> to vector<16x128xf32>
    %115 = arith.mulf %113, %114 : vector<16x128xf32>
    %116 = arith.addf %112, %115 : vector<16x128xf32>
    %117 = vector.broadcast %93 : vector<16x1xf32> to vector<16x128xf32>
    %118 = vector.broadcast %105 : vector<1x128xf32> to vector<16x128xf32>
    %119 = arith.mulf %117, %118 : vector<16x128xf32>
    %120 = arith.addf %116, %119 : vector<16x128xf32>
    %121 = vector.broadcast %100 : vector<16x1xf32> to vector<16x128xf32>
    %122 = arith.addf %120, %121 : vector<16x128xf32>
    %123 = vector.broadcast %94 : vector<16x1xf32> to vector<16x128xf32>
    %124 = vector.broadcast %103 : vector<1x128xf32> to vector<16x128xf32>
    %125 = arith.mulf %123, %124 : vector<16x128xf32>
    %126 = vector.broadcast %95 : vector<16x1xf32> to vector<16x128xf32>
    %127 = vector.broadcast %104 : vector<1x128xf32> to vector<16x128xf32>
    %128 = arith.mulf %126, %127 : vector<16x128xf32>
    %129 = arith.addf %125, %128 : vector<16x128xf32>
    %130 = vector.broadcast %96 : vector<16x1xf32> to vector<16x128xf32>
    %131 = vector.broadcast %105 : vector<1x128xf32> to vector<16x128xf32>
    %132 = arith.mulf %130, %131 : vector<16x128xf32>
    %133 = arith.addf %129, %132 : vector<16x128xf32>
    %134 = vector.broadcast %101 : vector<16x1xf32> to vector<16x128xf32>
    %135 = arith.addf %133, %134 : vector<16x128xf32>
    %136 = vector.broadcast %97 : vector<16x1xf32> to vector<16x128xf32>
    %137 = vector.broadcast %103 : vector<1x128xf32> to vector<16x128xf32>
    %138 = arith.mulf %136, %137 : vector<16x128xf32>
    %139 = vector.broadcast %98 : vector<16x1xf32> to vector<16x128xf32>
    %140 = vector.broadcast %104 : vector<1x128xf32> to vector<16x128xf32>
    %141 = arith.mulf %139, %140 : vector<16x128xf32>
    %142 = arith.addf %138, %141 : vector<16x128xf32>
    %143 = vector.broadcast %99 : vector<16x1xf32> to vector<16x128xf32>
    %144 = vector.broadcast %105 : vector<1x128xf32> to vector<16x128xf32>
    %145 = arith.mulf %143, %144 : vector<16x128xf32>
    %146 = arith.addf %142, %145 : vector<16x128xf32>
    %147 = vector.broadcast %102 : vector<16x1xf32> to vector<16x128xf32>
    %148 = arith.addf %146, %147 : vector<16x128xf32>
    %cst_15 = arith.constant 9.99999974E-5 : f32
    %149 = vector.broadcast %cst_15 : f32 to vector<16x128xf32>
    %150 = arith.maximumf %148, %149 : vector<16x128xf32>
    %151 = tpu.reciprocal %150 {approx = true} : vector<16x128xf32> -> vector<16x128xf32>
    %152 = vector.broadcast %106 : vector<1x128xf32> to vector<16x128xf32>
    %153 = arith.mulf %152, %150 : vector<16x128xf32>
    %154 = arith.subf %122, %153 : vector<16x128xf32>
    %155 = arith.mulf %154, %151 : vector<16x128xf32>
    %156 = vector.broadcast %108 : vector<1x128xf32> to vector<16x128xf32>
    %157 = arith.mulf %155, %156 : vector<16x128xf32>
    %158 = vector.broadcast %107 : vector<1x128xf32> to vector<16x128xf32>
    %159 = arith.mulf %158, %150 : vector<16x128xf32>
    %160 = arith.subf %135, %159 : vector<16x128xf32>
    %161 = arith.mulf %160, %151 : vector<16x128xf32>
    %162 = vector.broadcast %109 : vector<1x128xf32> to vector<16x128xf32>
    %163 = arith.mulf %161, %162 : vector<16x128xf32>
    %164 = arith.mulf %157, %157 : vector<16x128xf32>
    %165 = arith.mulf %163, %163 : vector<16x128xf32>
    %166 = arith.addf %164, %165 : vector<16x128xf32>
    %cst_16 = arith.constant dense<0.000000e+00> : vector<16xf32>
    %167 = vector.multi_reduction <add>, %166, %cst_16 [1] : vector<16x128xf32> to vector<16xf32>
    %168 = vector.shape_cast %167 : vector<16xf32> to vector<16x1xf32>
    %cst_17 = arith.constant 5.000000e-01 : f32
    %169 = vector.broadcast %cst_17 : f32 to vector<16x1xf32>
    %170 = arith.mulf %169, %168 : vector<16x1xf32>
    %c1_18 = arith.constant 1 : index
    %c0_19 = arith.constant 0 : index
    %c0_20 = arith.constant 0 : index
    %171 = vector.load %arg3[%c1_18, %c0_19, %c0_20] : memref<2x16x1xf32, #tpu.memory_space<vmem>>, vector<1x16x1xf32>
    %172 = vector.shape_cast %171 : vector<1x16x1xf32> to vector<16x1xf32>
    %173 = vector.shape_cast %170 : vector<16x1xf32> to vector<1x16x1xf32>
    tpu.vector_store %arg3[%c1_18, %c0_19, %c0_20], %173 {strides = array<i32>} : memref<2x16x1xf32, #tpu.memory_space<vmem>>, vector<1x16x1xf32>,
    return
  }
  func.func @transform_0(%arg0: i32) -> (i32, i32, i32) {
    %c0_i32 = arith.constant 0 : i32
    %c0_i32_0 = arith.constant 0 : i32
    %c0_i32_1 = arith.constant 0 : i32
    return %c0_i32, %arg0, %c0_i32_0 : i32, i32, i32
  }
  func.func @transform_1(%arg0: i32) -> (i32, i32, i32) {
    %c0_i32 = arith.constant 0 : i32
    %c0_i32_0 = arith.constant 0 : i32
    %c0_i32_1 = arith.constant 0 : i32
    %c0_i32_2 = arith.constant 0 : i32
    return %c0_i32, %c0_i32_0, %c0_i32_1 : i32, i32, i32
  }
  func.func @transform_2(%arg0: i32) -> (i32, i32, i32) {
    %c0_i32 = arith.constant 0 : i32
    %c0_i32_0 = arith.constant 0 : i32
    %c0_i32_1 = arith.constant 0 : i32
    return %c0_i32, %arg0, %c0_i32_0 : i32, i32, i32
  }
}

</mosaic_0001>

<bundles_post_ra>
// kernel: tpu_custom_call.1
= control target key start
LH: loop header
LB: loop body
LE: loop exit
PB: predicated region body
PF: predicated region fallthrough
CT: control target
= control target key end

     0   :  { %v475_v0 = vmov 5   ;;  %v476_v1 = vmov 1   ;;  %v477_v4 = vmov 6   ;;  %v478_v5 = vmov 2   ;;  %s709_s0 = inlined_call_operand.vmem [shape: f32[2,16,12], index: 0, kind: input, shape index: {}]   ;;  %s710_s1 = inlined_call_operand.vmem [shape: f32[2,8,128], index: 1, kind: input, shape index: {}]   ;;  %s711_s2 = inlined_call_operand.vmem [shape: f32[2,16,1], index: 2, kind: output, shape index: {}]  }
   0x1   :  { %440 = vset.pattern.permute.xlu0 %v475_v0  ;;  %434 = vset.pattern.permute.xlu1 %v476_v1  ;;  %v507_v2 = vld [vmem:[%s709_s0 + $0x8] sm:$0xff]  ;;  %v512_v3 = vld [vmem:[%s709_s0] sm:$0xff]  ;;  %v479_v6 = vmov 7   ;;  %v524_v7 = vld [vmem:[%s709_s0 + $0x10] sm:$0xff]  ;;  %v480_v8 = vmov 9   ;;  %v481_v9 = vmov 8   ;;  %v24_v36 = vlaneseq }
   0x2   :  { %99 = vperm.xlu0 %440, %v507_v2   ;;  %31 = vperm.xlu1 %434, %v512_v3   ;;  %v482_v10 = vmov 3   ;;  %v534_v11 = vld [vmem:[%s709_s0 + $0x18] sm:$0xff]  ;;  %v483_v12 = vmov 11   ;;  %v484_v13 = vmov 4   ;;  %v485_v14 = vmov 0   ;;  %v611_v43 = vld [vmem:[%s710_s1] sm:$0xff] }
   0x3   :  { %v486_v15 = vmov 10   ;;  %v604_v38 = vshrl.u32 %v24_v36, 7  ;;  %vm208_vm0 = vcmask 7168  }
   0x5   :  { %v40_v40 = vsub.s32 1, %v604_v38  ;;  %v26_v41 = vsub.s32 0, %v604_v38  ;;  %v56_v46 = vsub.s32 2, %v604_v38 }
   0x6   :  { %442 = vset.pattern.permute.xlu0 %v477_v4  ;;  %35 = vperm.xlu1 %434, %v507_v2  }
   0x7   :  { %117 = vperm.xlu0 %442, %v512_v3   ;;  %v41_v45 = vrot.slane %v611_v43, %v40_v40  ;;  %v27_v47 = vrot.slane %v611_v43, %v26_v41  ;;  %v57_v52 = vrot.slane %v611_v43, %v56_v46 }
   0xa   :  { %435 = vset.pattern.permute.xlu1 %v478_v5 }
   0xb   :  { %445 = vset.pattern.permute.xlu0 %v479_v6  ;;  %51 = vperm.xlu1 %435, %v507_v2  }
   0xc   :  { %131 = vperm.xlu0 %445, %v507_v2  }
   0xf   :  { %436 = vset.pattern.permute.xlu1 %v480_v8 }
  0x10   :  { %329 = vperm.xlu0 %445, %v524_v7   ;;  %63 = vperm.xlu1 %436, %v512_v3  }
  0x14   :  { %448 = vset.pattern.permute.xlu0 %v481_v9  ;;  %437 = vset.pattern.permute.xlu1 %v482_v10 }
  0x15   :  { %139 = vperm.xlu0 %448, %v512_v3   ;;  %73 = vperm.xlu1 %437, %v512_v3  }
  0x19   :  { %345 = vperm.xlu0 %448, %v534_v11   ;;  %77 = vperm.xlu1 %437, %v507_v2  }
  0x1d   :  { %451 = vset.pattern.permute.xlu0 %v483_v12  ;;  %438 = vset.pattern.permute.xlu1 %v484_v13 }
  0x1e   :  { %155 = vperm.xlu0 %451, %v507_v2   ;;  %87 = vperm.xlu1 %438, %v507_v2  }
  0x22   :  { %452 = vset.pattern.permute.xlu0 %v485_v14  ;;  %439 = vset.pattern.permute.xlu1 %v475_v0 }
  0x23   :  { %16 = vperm.xlu0 %452, %v512_v3   ;;  %95 = vperm.xlu1 %439, %v512_v3  }
  0x27   :  { %21 = vperm.xlu0 %452, %v507_v2   ;;  %441 = vset.pattern.permute.xlu1 %v486_v15 }
  0x28   :  { %107 = vperm.xlu1 %441, %v512_v3  }
  0x2b   :  { %218 = vperm.xlu0 %452, %v524_v7  }
  0x2c   :  { %111 = vperm.xlu1 %441, %v507_v2  }
  0x2f   :  { %455 = vset.pattern.permute.xlu0 %v476_v1 }
  0x30   :  { %237 = vperm.xlu0 %455, %v534_v11   ;;  %443 = vset.pattern.permute.xlu1 %v477_v4 }
  0x31   :  { %121 = vperm.xlu1 %443, %v507_v2  }
  0x34   :  { %456 = vset.pattern.permute.xlu0 %v484_v13 }
  0x35   :  { %83 = vperm.xlu0 %456, %v512_v3   ;;  %444 = vset.pattern.permute.xlu1 %v479_v6 }
  0x36   :  { %127 = vperm.xlu1 %444, %v512_v3  }
  0x39   :  { %285 = vperm.xlu0 %456, %v524_v7  }
  0x3a   :  { %446 = vset.pattern.permute.xlu1 %v477_v4 }
  0x3b   :  { %319 = vperm.xlu1 %446, %v524_v7  }
  0x3d   :  { %458 = vset.pattern.permute.xlu0 %v478_v5 }
  0x3e   :  { %47 = vperm.xlu0 %458, %v512_v3  }
  0x3f   :  { %323 = vperm.xlu1 %446, %v534_v11  }
  0x42   :  { %253 = vperm.xlu0 %458, %v534_v11  }
  0x43   :  { %447 = vset.pattern.permute.xlu1 %v479_v6 }
  0x44   :  { %333 = vperm.xlu1 %447, %v534_v11  }
  0x46   :  { %461 = vset.pattern.permute.xlu0 %v480_v8 }
  0x47   :  { %67 = vperm.xlu0 %461, %v507_v2  }
  0x48   :  { %449 = vset.pattern.permute.xlu1 %v481_v9 }
  0x49   :  { %143 = vperm.xlu1 %449, %v507_v2  }
  0x4b   :  { %265 = vperm.xlu0 %461, %v524_v7  }
  0x4d   :  { %341 = vperm.xlu1 %449, %v524_v7  }
  0x4f   :  { %465 = vset.pattern.permute.xlu0 %v486_v15 }
  0x50   :  { %313 = vperm.xlu0 %465, %v534_v11  }
  0x51   :  { %450 = vset.pattern.permute.xlu1 %v483_v12 }
  0x52   :  { %151 = vperm.xlu1 %450, %v512_v3  }
  0x54   :  { %466 = vset.pattern.permute.xlu0 %v483_v12 }
  0x56   :  { %353 = vperm.xlu1 %450, %v524_v7  }
  0x5a   :  { %357 = vperm.xlu1 %450, %v534_v11  }
  0x5e   :  { %453 = vset.pattern.permute.xlu1 %v485_v14 }
  0x5f   :  { %223 = vperm.xlu1 %453, %v534_v11  }
  0x63   :  { %454 = vset.pattern.permute.xlu1 %v476_v1 }
  0x64   :  { %233 = vperm.xlu1 %454, %v524_v7  }
  0x68   :  { %457 = vset.pattern.permute.xlu1 %v482_v10  ;;  %v166_v10 = vsub.s32 3, %v604_v38 }
  0x69   :  { %275 = vperm.xlu1 %457, %v524_v7  }
  0x6d   :  { %279 = vperm.xlu1 %457, %v534_v11  }
  0x71   :  { %459 = vset.pattern.permute.xlu1 %v484_v13 }
  0x72   :  { %289 = vperm.xlu1 %459, %v534_v11  }
  0x76   :  { %460 = vset.pattern.permute.xlu1 %v478_v5 }
  0x77   :  { %249 = vperm.xlu1 %460, %v524_v7  }
  0x7b   :  { %462 = vset.pattern.permute.xlu1 %v475_v0 }
  0x7c   :  { %297 = vperm.xlu1 %462, %v524_v7  }
  0x80   :  { %301 = vperm.xlu1 %462, %v534_v11  }
  0x81   :  { %v32_v16 = vpop.permute.xlu1 %31  ;;  %v579_v17 = vpop.permute.xlu0 %99 }
  0x82   :  { %v42_v51 = vmul.f32 %v41_v45, %v32_v16 }
  0x84   :  { %463 = vset.pattern.permute.xlu1 %v480_v8 }
  0x85   :  { %269 = vperm.xlu1 %463, %v534_v11   ;;  %v583_v18 = vpop.permute.xlu1 %35  ;;  %v182_v11 = vsub.s32 4, %v604_v38 }
  0x86   :  { %v118_v19 = vpop.permute.xlu0 %117 }
  0x87   :  { %v124_v62 = vmul.f32 %v118_v19, %v27_v47  ;;  %v103_v19 = vmul.f32 %v579_v17, %v57_v52 }
  0x89   :  { %464 = vset.pattern.permute.xlu1 %v486_v15  ;;  %v43_v15 = vmul.f32 %v41_v45, %v583_v18 }
  0x8a   :  { %309 = vperm.xlu1 %464, %v524_v7   ;;  %v586_v20 = vpop.permute.xlu1 %51 }
  0x8b   :  { %v132_v21 = vpop.permute.xlu0 %131  ;;  %v59_v18 = vmul.f32 %v57_v52, %v586_v20 }
  0x8c   :  { %v135_v60 = vmul.f32 %v132_v21, %v41_v45 }
  0x8f   :  { %v64_v22 = vpop.permute.xlu1 %63  ;;  %v588_v23 = vpop.permute.xlu0 %329 }
  0x94   :  { %v590_v24 = vpop.permute.xlu1 %73  ;;  %v140_v25 = vpop.permute.xlu0 %139 }
  0x95   :  { %v146_v4 = vmul.f32 %v140_v25, %v57_v52 }
  0x98   :  { %v78_v26 = vpop.permute.xlu1 %77  ;;  %v592_v27 = vpop.permute.xlu0 %345 }
  0x99   :  { %v81_v12 = vmul.f32 %v78_v26, %v27_v47  ;;  %v183_v26 = vrot.slane %v611_v43, %v182_v11 }
  0x9d   :  { %v88_v28 = vpop.permute.xlu1 %87  ;;  %v156_v29 = vpop.permute.xlu0 %155 }
  0x9e   :  { %v91_v7 = vmul.f32 %v88_v28, %v41_v45 }
  0xa0   :  { %v93_v21 = vadd.f32 %v91_v7, %v81_v12 }
  0xa2   :  { %v17_v30 = vpop.permute.xlu0 %16  ;;  %v594_v31 = vpop.permute.xlu1 %95  ;;  %v105_v17 = vadd.f32 %v103_v19, %v93_v21 }
  0xa3   :  { %v28_v49 = vmul.f32 %v27_v47, %v17_v30 }
  0xa5   :  { %v44_v54 = vadd.f32 %v42_v51, %v28_v49  ;;  %v192_v49 = vsub.s32 6, %v604_v38 }
  0xa6   :  { %v22_v32 = vpop.permute.xlu0 %21 }
  0xa7   :  { %v596_v33 = vpop.permute.xlu1 %107  ;;  %v29_v9 = vmul.f32 %v27_v47, %v22_v32  ;;  %v80_v32 = vmul.f32 %v590_v24, %v27_v47 }
  0xa9   :  { %v45_v28 = vadd.f32 %v43_v15, %v29_v9 }
  0xaa   :  { %v598_v34 = vpop.permute.xlu0 %218 }
  0xab   :  { %v600_v35 = vpop.permute.xlu1 %111  ;;  %v61_v51 = vadd.f32 %v59_v18, %v45_v28 }
  0xaf   :  { %v602_v37 = vpop.permute.xlu0 %237 }
  0xb0   :  { %v122_v39 = vpop.permute.xlu1 %121 }
  0xb1   :  { %v125_v61 = vmul.f32 %v122_v39, %v27_v47 }
  0xb3   :  { %v137_v1 = vadd.f32 %v135_v60, %v125_v61 }
  0xb4   :  { %v84_v42 = vpop.permute.xlu0 %83 }
  0xb5   :  { %v128_v44 = vpop.permute.xlu1 %127 }
  0xb6   :  { %v134_v63 = vmul.f32 %v128_v44, %v41_v45 }
  0xb8   :  { %v620_v48 = vpop.permute.xlu0 %285  ;;  %v136_v5 = vadd.f32 %v134_v63, %v124_v62  ;;  %v193_v63 = vrot.slane %v611_v43, %v192_v49 }
  0xba   :  { %v622_v50 = vpop.permute.xlu1 %319  ;;  %v148_v16 = vadd.f32 %v146_v4, %v136_v5 }
  0xbd   :  { %v48_v53 = vpop.permute.xlu0 %47 }
  0xbe   :  { %v58_v55 = vmul.f32 %v57_v52, %v48_v53  ;;  %v627_v56 = vpop.permute.xlu1 %323 }
  0xc0   :  { %v60_v57 = vadd.f32 %v58_v55, %v44_v54  ;;  %v102_v55 = vmul.f32 %v594_v31, %v57_v52 }
  0xc1   :  { %v637_v13 = vpop.permute.xlu0 %253 }
  0xc2   :  { %v629_v58 = vadd.f32 %v64_v22, %v60_v57  ;;  %v90_v22 = vmul.f32 %v84_v42, %v41_v45  ;;  %v176_v45 = vsub.s32 5, %v604_v38  ;;  %v115_v57 = vadd.f32 %v600_v35, %v105_v17  ;;  %v662_v35 = vld [vmem:[%s710_s1 + $0x8] sm:$0xff] }
  0xc3   :  { %v631_v59 = vpop.permute.xlu1 %333 }
  0xc4   :  { %v92_v39 = vadd.f32 %v90_v22, %v80_v32  ;;  %v177_v61 = vrot.slane %v611_v43, %v176_v45 }
  0xc6   :  { %v68_v42 = vpop.permute.xlu0 %67  ;;  %v104_v47 = vadd.f32 %v102_v55, %v92_v39 }
  0xc7   :  { %v71_v24 = vadd.f32 %v68_v42, %v61_v51 }
  0xc8   :  { %v144_v0 = vpop.permute.xlu1 %143 }
  0xc9   :  { %v147_v2 = vmul.f32 %v144_v0, %v57_v52  ;;  %v114_v52 = vadd.f32 %v596_v33, %v104_v47 }
  0xcb   :  { %v149_v3 = vadd.f32 %v147_v2, %v137_v1 }
  0xcc   :  { %v633_v6 = vpop.permute.xlu1 %341 }
  0xcd   :  { %v159_v8 = vadd.f32 %v156_v29, %v149_v3  ;;  %v167_v29 = vrot.slane %v611_v43, %v166_v10  ;;  %v243_v43 = vrot.slane %v662_v35, %v40_v40 }
  0xcf   :  { %v161_v14 = vmax.f32 %v159_v8, 0.0001  ;;  %v337_v39 = vmul.f32 %v631_v59, %v243_v43  ;;  %v369_v59 = vrot.slane %v662_v35, %v166_v10 }
  0xd1   :  { %467 = vrcp.f32 %v161_v14  ;;  %v152_v25 = vpop.permute.xlu1 %151  ;;  %v169_v53 = vmul.f32 %v167_v29, %v161_v14  ;;  %v185_v54 = vmul.f32 %v183_v26, %v161_v14  ;;  %v229_v14 = vrot.slane %v662_v35, %v26_v41 }
  0xd2   :  { %v158_v30 = vadd.f32 %v152_v25, %v148_v16 }
  0xd3   :  { %v171_v60 = vsub.f32 %v71_v24, %v169_v53  ;;  %v187_v62 = vsub.f32 %v115_v57, %v185_v54  ;;  %v326_v40 = vmul.f32 %v622_v50, %v229_v14  ;;  %v327_v51 = vmul.f32 %v627_v56, %v229_v14 }
  0xd4   :  { %v160_v36 = vmax.f32 %v158_v30, 0.0001 }
  0xd5   :  { %v354_v44 = vpop.permute.xlu1 %353  ;;  %v339_v53 = vadd.f32 %v337_v39, %v327_v51 }
  0xd6   :  { %469 = vrcp.f32 %v160_v36  ;;  %v168_v1 = vmul.f32 %v167_v29, %v160_v36  ;;  %v184_v2 = vmul.f32 %v183_v26, %v160_v36  ;;  %v259_v29 = vrot.slane %v662_v35, %v56_v46 }
  0xd8   :  { %v170_v8 = vsub.f32 %v629_v58, %v168_v1  ;;  %v186_v9 = vsub.f32 %v114_v52, %v184_v2  ;;  %v336_v58 = vmul.f32 %v588_v23, %v243_v43  ;;  %v348_v41 = vmul.f32 %v633_v6, %v259_v29 }
  0xd9   :  { %v358_v20 = vpop.permute.xlu1 %357  ;;  %v349_v46 = vmul.f32 %v592_v27, %v259_v29  ;;  %v230_v6 = vmul.f32 %v229_v14, %v598_v34  ;;  %v245_v27 = vmul.f32 %v243_v43, %v602_v37  ;;  %v261_v52 = vmul.f32 %v259_v29, %v637_v13 }
  0xda   :  { %v338_v18 = vadd.f32 %v336_v58, %v326_v40 }
  0xdb   :  { %v468_v0 = vpop.eup %467  ;;  %v351_v55 = vadd.f32 %v349_v46, %v339_v53 }
  0xdc   :  { %v173_v3 = vmul.f32 %v468_v0, %v171_v60  ;;  %v189_v31 = vmul.f32 %v468_v0, %v187_v62  ;;  %v350_v17 = vadd.f32 %v348_v41, %v338_v18 }
  0xdd   :  { %v361_v24 = vadd.f32 %v358_v20, %v351_v55 }
  0xde   :  { %v224_v4 = vpop.permute.xlu1 %223  ;;  %v179_v5 = vmul.f32 %v177_v61, %v173_v3  ;;  %v195_v7 = vmul.f32 %v193_v63, %v189_v31  ;;  %v360_v42 = vadd.f32 %v354_v44, %v350_v17  ;;  %v266_v44 = vpop.permute.xlu0 %265 }
  0xdf   :  { %v363_v56 = vmax.f32 %v361_v24, 0.0001 }
  0xe0   :  { %v470_v12 = vpop.eup %469  ;;  %v197_v15 = vmul.f32 %v179_v5, %v179_v5  ;;  %v199_v16 = vmul.f32 %v195_v7, %v195_v7  ;;  %v362_v50 = vmax.f32 %v360_v42, 0.0001 }
  0xe1   :  { %v172_v19 = vmul.f32 %v470_v12, %v170_v8  ;;  %v188_v21 = vmul.f32 %v470_v12, %v186_v9  ;;  %v371_v13 = vmul.f32 %v369_v59, %v363_v56 }
  0xe2   :  { %v201_v33 = vadd.f32 %v199_v16, %v197_v15  ;;  %471 = vrcp.f32 %v362_v50  ;;  %v370_v1 = vmul.f32 %v369_v59, %v362_v50  ;;  %v314_v12 = vpop.permute.xlu0 %313  ;;  %v292_v15 = vmul.f32 %v620_v48, %v243_v43 }
  0xe3   :  { %v234_v22 = vpop.permute.xlu1 %233  ;;  %v178_v25 = vmul.f32 %v177_v61, %v172_v19  ;;  %v194_v28 = vmul.f32 %v193_v63, %v188_v21  ;;  %v231_v63 = vmul.f32 %v229_v14, %v224_v4  ;;  %473 = vrcp.f32 %v363_v56 }
  0xe4   :  { %204 = vadd.xlane.f32.xlu0 %v201_v33  ;;  %v244_v57 = vmul.f32 %v243_v43, %v234_v22  ;;  %v385_v4 = vrot.slane %v662_v35, %v182_v11 }
  0xe5   :  { %v196_v26 = vmul.f32 %v178_v25, %v178_v25  ;;  %v198_v30 = vmul.f32 %v194_v28, %v194_v28  ;;  %v247_v5 = vadd.f32 %v245_v27, %v231_v63 }
  0xe6   :  { %v246_v60 = vadd.f32 %v244_v57, %v230_v6  ;;  %v387_v22 = vmul.f32 %v385_v4, %v363_v56 }
  0xe7   :  { %v200_v32 = vadd.f32 %v198_v30, %v196_v26  ;;  %v263_v19 = vadd.f32 %v261_v52, %v247_v5  ;;  %v395_v26 = vrot.slane %v662_v35, %v192_v49 }
  0xe8   :  { %v276_v36 = vpop.permute.xlu1 %275 }
  0xe9   :  { %202 = vadd.xlane.f32.xlu1 %v200_v32  ;;  %v282_v37 = vmul.f32 %v276_v36, %v229_v14  ;;  %v386_v32 = vmul.f32 %v385_v4, %v362_v50 }
  0xeb   :  { %v294_v58 = vadd.f32 %v292_v15, %v282_v37 }
  0xec   :  { %v280_v23 = vpop.permute.xlu1 %279  ;;  %v472_v20 = vpop.eup %471 }
  0xed   :  { %v283_v31 = vmul.f32 %v280_v23, %v229_v14  ;;  %v474_v48 = vpop.eup %473 }
  0xf1   :  { %v290_v54 = vpop.permute.xlu1 %289 }
  0xf2   :  { %v293_v3 = vmul.f32 %v290_v54, %v243_v43 }
  0xf4   :  { %v295_v10 = vadd.f32 %v293_v3, %v283_v31 }
  0xf6   :  { %v250_v47 = vpop.permute.xlu1 %249 }
  0xf7   :  { %v260_v61 = vmul.f32 %v259_v29, %v250_v47 }
  0xf9   :  { %v262_v62 = vadd.f32 %v260_v61, %v246_v60 }
  0xfb   :  { %v272_v0 = vadd.f32 %v266_v44, %v262_v62  ;;  %v298_v2 = vpop.permute.xlu1 %297 }
  0xfc   :  { %v304_v21 = vmul.f32 %v298_v2, %v259_v29 }
  0xfd   :  { %v372_v34 = vsub.f32 %v272_v0, %v370_v1 }
  0xfe   :  { %v306_v30 = vadd.f32 %v304_v21, %v294_v58 }
  0xff   :  { %v374_v7 = vmul.f32 %v472_v20, %v372_v34  ;;  %v302_v8 = vpop.permute.xlu1 %301 }
 0x100   :  { %v305_v9 = vmul.f32 %v302_v8, %v259_v29  ;;  %v379_v29 = vrot.slane %v662_v35, %v176_v45 }
 0x102   :  { %v307_v16 = vadd.f32 %v305_v9, %v295_v10  ;;  %v380_v46 = vmul.f32 %v379_v29, %v374_v7 }
 0x104   :  { %v317_v33 = vadd.f32 %v314_v12, %v307_v16  ;;  %v270_v25 = vpop.permute.xlu1 %269  ;;  %v398_v54 = vmul.f32 %v380_v46, %v380_v46 }
 0x105   :  { %v273_v28 = vadd.f32 %v270_v25, %v263_v19 }
 0x106   :  { %v389_v40 = vsub.f32 %v317_v33, %v387_v22 }
 0x107   :  { %v373_v43 = vsub.f32 %v273_v28, %v371_v13 }
 0x108   :  { %v391_v14 = vmul.f32 %v474_v48, %v389_v40 }
 0x109   :  { %v375_v41 = vmul.f32 %v474_v48, %v373_v43  ;;  %v310_v11 = vpop.permute.xlu1 %309 }
 0x10a   :  { %v316_v18 = vadd.f32 %v310_v11, %v306_v30  ;;  %v397_v36 = vmul.f32 %v395_v26, %v391_v14 }
 0x10b   :  { %v381_v17 = vmul.f32 %v379_v29, %v375_v41 }
 0x10c   :  { %v388_v39 = vsub.f32 %v316_v18, %v386_v32  ;;  %v401_v42 = vmul.f32 %v397_v36, %v397_v36 }
 0x10d   :  { %v399_v23 = vmul.f32 %v381_v17, %v381_v17 }
 0x10e   :  { %v390_v51 = vmul.f32 %v472_v20, %v388_v39 }
 0x10f   :  { %v403_v49 = vadd.f32 %v401_v42, %v399_v23 }
 0x110   :  { %v396_v53 = vmul.f32 %v395_v26, %v390_v51 }
 0x111   :  { %406 = vadd.xlane.f32.xlu0 %v403_v49 }
 0x112   :  { %v400_v55 = vmul.f32 %v396_v53, %v396_v53 }
 0x114   :  { %v402_v57 = vadd.f32 %v400_v55, %v398_v54 }
 0x116   :  { %404 = vadd.xlane.f32.xlu1 %v402_v57 }
 0x171   :  { %v205_v38 = vpop.xlane.xlu0 %204 }
 0x172   :  { %v207_v6 = vmul.f32 0.5, %v205_v38 }
 0x174   :  { %210 = vst.msk [vmem:[%s711_s2 + $0x8] sm:$0xff] %vm208_vm0, %v207_v6 }
 0x176   :  { %v203_v45 = vpop.xlane.xlu1 %202 }
 0x177   :  { %v206_v35 = vmul.f32 0.5, %v203_v45 }
 0x179   :  { %209 = vst.msk [vmem:[%s711_s2] sm:$0xff] %vm208_vm0, %v206_v35 }
 0x19e   :  { %v407_v50 = vpop.xlane.xlu0 %406 }
 0x19f   :  { %v409_v24 = vmul.f32 0.5, %v407_v50 }
 0x1a1   :  { %421 = vst.msk [vmem:[%s711_s2 + $0x18] sm:$0xff] %vm208_vm0, %v409_v24 }
 0x1a3   :  { %v405_v47 = vpop.xlane.xlu1 %404 }
 0x1a4   :  { %v408_v60 = vmul.f32 0.5, %v405_v47 }
 0x1a6   :  { %420 = vst.msk [vmem:[%s711_s2 + $0x10] sm:$0xff] %vm208_vm0, %v408_v60 }

</bundles_post_ra>
